<compile_context>
chip_gen: v5e
topology: v5e:2x2
jax: 0.10.0
libtpu: 0.0.40
codegen_flags: <defaults>
</compile_context>

<pallas_src>
import jax
import jax.numpy as jnp
from jax.experimental import pallas as pl
from jax.experimental.pallas import tpu as pltpu


def _round_up(x, m):
    return (x + m - 1) // m * m


def _chip_vmem_budget():
    """Physical VMEM capacity (bytes) and the scoped-VMEM cap to request."""
    vmem_cap = None
    try:
        info = pltpu.get_tpu_info()
        vmem_cap = int(getattr(info, "vmem_capacity_bytes", 0)) or None
    except Exception:
        vmem_cap = None
    if vmem_cap is None:
        vmem_cap = 64 << 20            # conservative (v7x-class) fallback
    if vmem_cap <= (64 << 20):         # v7x: 64 MiB physical, 2 TCs/chip
        return vmem_cap, 40 << 20
    return vmem_cap, 96 << 20          # v5e / v6e: 128 MiB physical


def _resid_linear_kernel_f32out(x_ref, w_ref, b_ref, xres_ref, o_ref):
    """f32 output: accumulate directly into the k-resident output block."""
    k = pl.program_id(2)

    @pl.when(k == 0)
    def _():
        # Fold the bias into the accumulator init (cold path).
        o_ref[...] = jnp.broadcast_to(b_ref[...], o_ref.shape)

    o_ref[...] += jnp.dot(x_ref[...], w_ref[...],
                          preferred_element_type=jnp.float32)

    @pl.when(k == pl.num_programs(2) - 1)
    def _():
        o_ref[...] = jnp.tanh(o_ref[...] + xres_ref[...].astype(jnp.float32))


def _resid_linear_kernel_acc(x_ref, w_ref, b_ref, xres_ref, o_ref, acc_ref):
    """Non-f32 output: accumulate in an f32 VMEM scratch, cast at the end."""
    k = pl.program_id(2)

    @pl.when(k == 0)
    def _():
        acc_ref[...] = jnp.broadcast_to(b_ref[...], acc_ref.shape)

    acc_ref[...] += jnp.dot(x_ref[...], w_ref[...],
                            preferred_element_type=jnp.float32)

    @pl.when(k == pl.num_programs(2) - 1)
    def _():
        y = acc_ref[...] + xres_ref[...].astype(jnp.float32)
        o_ref[...] = jnp.tanh(y).astype(o_ref.dtype)


def resid_linear(x, w, b, *, tb=None, tn=None, tk=None,
                 compute_dtype=jnp.bfloat16):
    """y = tanh(x @ w + b + x).

    x: (B, n_in), w: (n_in, n_out) (pre-transposed vs. torch), b: (n_out,).
    compute_dtype: dtype fed to the MXU (default bf16 on all generations);
                   accumulation, bias, residual add and tanh stay f32.
    Note: with a sub-32-bit compute_dtype the residual is also read in that
    dtype (single shared copy of x); this costs a little residual precision
    ahead of tanh and is covered by the loose-tolerance test below.
    """
    B, n_in = x.shape
    k_dim, n_out = w.shape
    assert k_dim == n_in
    assert n_in == n_out, "residual connection requires n_in == n_out"
    out_dtype = x.dtype
    mxu_dtype = jnp.dtype(compute_dtype if compute_dtype is not None else x.dtype)
    itm = mxu_dtype.itemsize
    otm = jnp.dtype(out_dtype).itemsize

    vmem_cap, vmem_budget = _chip_vmem_budget()
    big_vmem = vmem_cap > (64 << 20)

    # Per-generation tile defaults (MXU-/lane-aligned).
    if tb is None:
        tb = 512
    if tn is None:
        tn = 512
    if tk is None:
        tk = 1024 if (big_vmem and itm < 4) else 512

    # Clamp to the (padded) problem; bf16 packs 2 rows/sublane -> 16-row grain.
    sub = 16 if itm < 4 else 8
    tb = max(sub, min(tb, _round_up(B, sub)))
    tn = max(128, min(tn, _round_up(n_out, 128)))
    tk = max(128, min(tk, _round_up(n_in, 128)))
    Bp = _round_up(B, tb)
    Np = _round_up(n_out, tn)
    Kp = _round_up(n_in, tk)

    # v7x has 2 TensorCores sharding the "parallel" grid axes; try to provide
    # at least two parallel tiles on small problems.
    if not big_vmem and (Bp // tb) * (Np // tn) < 2:
        if Bp >= 2 * sub:
            tb = _round_up(Bp // 2, sub)
            Bp = _round_up(B, tb)
        elif Np >= 256:
            tn = _round_up(Np // 2, 128)
            Np = _round_up(n_out, tn)

    # One padded/cast copy of x is shared by the MXU operand and the residual
    # read (valid because n_in == n_out).  Pads/casts are skipped when no-ops.
    P = max(Kp, Np)
    x_p = x if x.dtype == mxu_dtype else x.astype(mxu_dtype)
    if (Bp, P) != (B, n_in):
        x_p = jnp.pad(x_p, ((0, Bp - B), (0, P - n_in)))
    w_p = w if w.dtype == mxu_dtype else w.astype(mxu_dtype)
    if (Kp, Np) != (n_in, n_out):
        w_p = jnp.pad(w_p, ((0, Kp - n_in), (0, Np - n_out)))
    b_p = b if b.dtype == jnp.float32 else b.astype(jnp.float32)
    b_p = b_p.reshape(1, n_out)
    if Np != n_out:
        b_p = jnp.pad(b_p, ((0, 0), (0, Np - n_out)))

    grid = (Bp // tb, Np // tn, Kp // tk)      # reduction axis last

    use_scratch = jnp.dtype(out_dtype) != jnp.float32
    kernel = _resid_linear_kernel_acc if use_scratch else _resid_linear_kernel_f32out
    scratch = [pltpu.VMEM((tb, tn), jnp.float32)] if use_scratch else []

    # VMEM estimate: double-buffered tiles (+ optional f32 accumulator), 2x headroom.
    est = (2 * (tb * tk * itm + tk * tn * itm + tb * tn * itm + tn * 4)
           + 2 * tb * tn * otm
           + (tb * tn * 4 if use_scratch else 0))
    vmem_limit = int(min(max(2 * est, 32 << 20), vmem_budget))

    cost = pl.CostEstimate(
        flops=int(2 * Bp * Kp * Np),
        transcendentals=int(Bp * Np),
        bytes_accessed=int((Np // tn) * Bp * Kp * itm      # x re-streamed per j
                           + (Bp // tb) * Kp * Np * itm    # W re-streamed per i
                           + Bp * Np * itm                 # residual read
                           + (Bp // tb) * Np * 4           # bias
                           + Bp * Np * otm),               # output write
    )

    out = pl.pallas_call(
        kernel,
        out_shape=jax.ShapeDtypeStruct((Bp, Np), out_dtype),
        grid_spec=pltpu.PrefetchScalarGridSpec(
            num_scalar_prefetch=0,
            grid=grid,
            in_specs=[
                pl.BlockSpec((tb, tk), lambda i, j, k: (i, k)),   # x (MXU operand)
                pl.BlockSpec((tk, tn), lambda i, j, k: (k, j)),   # weight tile
                pl.BlockSpec((1, tn), lambda i, j, k: (0, j)),    # bias
                pl.BlockSpec((tb, tn), lambda i, j, k: (i, j)),   # x (residual view)
            ],
            out_specs=pl.BlockSpec((tb, tn), lambda i, j, k: (i, j)),
            scratch_shapes=scratch,
        ),
        compiler_params=pltpu.CompilerParams(
            dimension_semantics=("parallel", "parallel", "arbitrary"),
            vmem_limit_bytes=vmem_limit,
        ),
        cost_estimate=cost,
    )(x_p, w_p, b_p, x_p)

    if (Bp, Np) == (B, n_out):
        return out
    return out[:B, :n_out]


if __name__ == "__main__":
    key = jax.random.PRNGKey(0)
    k_x, k_w, k_b = jax.random.split(key, 3)

    B, n_in = 16, 32          # small synthetic shapes; n_out == n_in
    n_out = n_in

    x = jax.random.normal(k_x, (B, n_in), dtype=jnp.float32)
    # Deterministic init mimicking nn.Linear's U(-1/sqrt(n_in), 1/sqrt(n_in))
    bound = 1.0 / (n_in ** 0.5)
    w = jax.random.uniform(k_w, (n_in, n_out), jnp.float32, -bound, bound)
    b = jax.random.uniform(k_b, (n_out,), jnp.float32, -bound, bound)

    ref = jnp.tanh(x @ w + b + x)

    # Default path: bf16 MXU operands, f32 accumulate/residual/tanh, f32 out.
    out = resid_linear(x, w, b)
    jax.block_until_ready(out)
    assert out.shape == (B, n_out) and out.dtype == x.dtype
    assert float(jnp.max(jnp.abs(out - ref))) < 5e-2, "bf16-MXU mismatch vs reference"

    # Full-f32 path (tight-tolerance correctness check).
    out_f32 = resid_linear(x, w, b, compute_dtype=jnp.float32)
    jax.block_until_ready(out_f32)
    assert jnp.allclose(out_f32, ref, atol=1e-5, rtol=1e-5), "f32 mismatch vs reference"

    # bf16 in/out exercises the scratch-accumulator kernel variant.
    out_bf16 = resid_linear(x.astype(jnp.bfloat16), w.astype(jnp.bfloat16),
                            b.astype(jnp.bfloat16))
    jax.block_until_ready(out_bf16)
    assert out_bf16.dtype == jnp.bfloat16
    assert float(jnp.max(jnp.abs(out_bf16.astype(jnp.float32) - ref))) < 5e-2, \
        "bf16 in/out mismatch vs reference"

    print("KERNEL_OK")
</pallas_src>

<mosaic_0001>
module attributes {stable_mosaic.version = 11 : i64} {
  func.func @_resid_linear_kernel_f32out(%arg0: i32, %arg1: i32, %arg2: i32, %arg3: memref<16x128xbf16, #tpu.memory_space<vmem>>, %arg4: memref<128x128xbf16, #tpu.memory_space<vmem>>, %arg5: memref<1x128xf32, #tpu.memory_space<vmem>>, %arg6: memref<16x128xbf16, #tpu.memory_space<vmem>>, %arg7: memref<16x128xf32, #tpu.memory_space<vmem>>) attributes {dimension_semantics = [#tpu.dimension_semantics<parallel>, #tpu.dimension_semantics<parallel>, #tpu.dimension_semantics<arbitrary>], iteration_bounds = array<i64: 1, 1, 1>, scalar_prefetch = 0 : i64, scratch_operands = 0 : i64, tpu.core_type = #tpu.core_type<tc>, window_params = [{transform_indices = @transform_0, window_bounds = array<i64: 16, 128>}, {transform_indices = @transform_1, window_bounds = array<i64: 128, 128>}, {transform_indices = @transform_2, window_bounds = array<i64: 1, 128>}, {transform_indices = @transform_3, window_bounds = array<i64: 16, 128>}, {transform_indices = @transform_4, window_bounds = array<i64: 16, 128>}]} {
    %c0_i32 = arith.constant 0 : i32
    %0 = arith.cmpi eq, %arg2, %c0_i32 : i32
    %1 = arith.extui %0 : i1 to i32
    %c0_i32_0 = arith.constant 0 : i32
    %2 = arith.cmpi ne, %1, %c0_i32_0 : i32
    scf.if %2 {
      %c0_10 = arith.constant 0 : index
      %c0_11 = arith.constant 0 : index
      %12 = vector.load %arg5[%c0_10, %c0_11] : memref<1x128xf32, #tpu.memory_space<vmem>>, vector<1x128xf32>
      %13 = vector.shape_cast %12 : vector<1x128xf32> to vector<1x128xf32>
      %14 = vector.broadcast %13 : vector<1x128xf32> to vector<16x128xf32>
      %c0_12 = arith.constant 0 : index
      %c0_13 = arith.constant 0 : index
      %15 = vector.load %arg7[%c0_12, %c0_13] : memref<16x128xf32, #tpu.memory_space<vmem>>, vector<16x128xf32>
      tpu.vector_store %arg7[%c0_12, %c0_13], %14 {strides = array<i32>} : memref<16x128xf32, #tpu.memory_space<vmem>>, vector<16x128xf32>,
    } else {
    }
    %c0 = arith.constant 0 : index
    %c0_1 = arith.constant 0 : index
    %3 = vector.load %arg7[%c0, %c0_1] : memref<16x128xf32, #tpu.memory_space<vmem>>, vector<16x128xf32>
    %c0_2 = arith.constant 0 : index
    %c0_3 = arith.constant 0 : index
    %4 = vector.load %arg3[%c0_2, %c0_3] : memref<16x128xbf16, #tpu.memory_space<vmem>>, vector<16x128xbf16>
    %c0_4 = arith.constant 0 : index
    %c0_5 = arith.constant 0 : index
    %5 = vector.load %arg4[%c0_4, %c0_5] : memref<128x128xbf16, #tpu.memory_space<vmem>>, vector<128x128xbf16>
    %cst = arith.constant dense<0.000000e+00> : vector<16x128xf32>
    %6 = tpu.matmul %4, %5, %cst {dimension_numbers = #tpu.dot_dimension_numbers<[1], [0], [0], [1], [0, 0, 1, 1], [], []>} : vector<16x128xbf16>, vector<128x128xbf16>, vector<16x128xf32> -> vector<16x128xf32>
    %7 = arith.addf %3, %6 : vector<16x128xf32>
    %c0_6 = arith.constant 0 : index
    %c0_7 = arith.constant 0 : index
    %8 = vector.load %arg7[%c0_6, %c0_7] : memref<16x128xf32, #tpu.memory_space<vmem>>, vector<16x128xf32>
    tpu.vector_store %arg7[%c0_6, %c0_7], %7 {strides = array<i32>} : memref<16x128xf32, #tpu.memory_space<vmem>>, vector<16x128xf32>,
    %c0_i32_8 = arith.constant 0 : i32
    %9 = arith.cmpi eq, %arg2, %c0_i32_8 : i32
    %10 = arith.extui %9 : i1 to i32
    %c0_i32_9 = arith.constant 0 : i32
    %11 = arith.cmpi ne, %10, %c0_i32_9 : i32
    scf.if %11 {
      %c0_10 = arith.constant 0 : index
      %c0_11 = arith.constant 0 : index
      %12 = vector.load %arg7[%c0_10, %c0_11] : memref<16x128xf32, #tpu.memory_space<vmem>>, vector<16x128xf32>
      %c0_12 = arith.constant 0 : index
      %c0_13 = arith.constant 0 : index
      %13 = vector.load %arg6[%c0_12, %c0_13] : memref<16x128xbf16, #tpu.memory_space<vmem>>, vector<16x128xbf16>
      %14 = arith.extf %13 : vector<16x128xbf16> to vector<16x128xf32>
      %15 = arith.addf %12, %14 : vector<16x128xf32>
      %16 = math.tanh %15 : vector<16x128xf32>
      %c0_14 = arith.constant 0 : index
      %c0_15 = arith.constant 0 : index
      %17 = vector.load %arg7[%c0_14, %c0_15] : memref<16x128xf32, #tpu.memory_space<vmem>>, vector<16x128xf32>
      tpu.vector_store %arg7[%c0_14, %c0_15], %16 {strides = array<i32>} : memref<16x128xf32, #tpu.memory_space<vmem>>, vector<16x128xf32>,
    } else {
    }
    return
  }
  func.func @transform_0(%arg0: i32, %arg1: i32, %arg2: i32) -> (i32, i32) {
    %c0_i32 = arith.constant 0 : i32
    return %arg0, %arg2 : i32, i32
  }
  func.func @transform_1(%arg0: i32, %arg1: i32, %arg2: i32) -> (i32, i32) {
    %c0_i32 = arith.constant 0 : i32
    return %arg2, %arg1 : i32, i32
  }
  func.func @transform_2(%arg0: i32, %arg1: i32, %arg2: i32) -> (i32, i32) {
    %c0_i32 = arith.constant 0 : i32
    %c0_i32_0 = arith.constant 0 : i32
    return %c0_i32, %arg1 : i32, i32
  }
  func.func @transform_3(%arg0: i32, %arg1: i32, %arg2: i32) -> (i32, i32) {
    %c0_i32 = arith.constant 0 : i32
    return %arg0, %arg1 : i32, i32
  }
  func.func @transform_4(%arg0: i32, %arg1: i32, %arg2: i32) -> (i32, i32) {
    %c0_i32 = arith.constant 0 : i32
    return %arg0, %arg1 : i32, i32
  }
}

</mosaic_0001>

<bundles_post_ra>
// kernel: tpu_custom_call.1
= control target key start
LH: loop header
LB: loop body
LE: loop exit
PB: predicated region body
PF: predicated region fallthrough
CT: control target
= control target key end

     0   :  { %9 = vsyncpa [#allocation3], 0  ;;  %s414_s0 = inlined_call_operand.hbm [shape: bf16[16,128], index: 0, kind: input, shape index: {}]   ;;  %s415_s1 = inlined_call_operand.hbm [shape: bf16[128,128], index: 1, kind: input, shape index: {}]   ;;  %s416_s2 = inlined_call_operand.vmem [shape: f32[1,128], index: 2, kind: input, shape index: {}]   ;;  %s417_s3 = inlined_call_operand.hbm [shape: bf16[16,128], index: 3, kind: input, shape index: {}]   ;;  %s418_s4 = inlined_call_operand.hbm [shape: f32[16,128], index: 4, kind: output, shape index: {}]  }
   0x1   :  { %10 = vsyncpa [#allocation6], 0 }
   0x2   :  { %11 = vsyncpa [#allocation4], 0  ;;  %s29_s17 = sshll.u32 %s415_s1, 4  ;;  %s366_s18 = smov [#allocation5]   ;;  %s30_s17 = int_to_ptr.hbm [resolvable:$true] %s29_s17 }
   0x3   :  { %s31_s19 = sshll.u32 %s366_s18, 4  ;;  %s16_s22 = sshll.u32 %s414_s0, 4  ;;  %s32_s19 = int_to_ptr.vmem [resolvable:$true] %s31_s19  ;;  %s17_s22 = int_to_ptr.hbm [resolvable:$true] %s16_s22 }
   0x4   :  { %s367_s23 = smov 64   ;;  %s368_s24 = smov 4  }
   0x5   :  { %37 = dma.hbm_to_vmem [thread:$0]  %s30_s17, 1024, %s32_s19, [#allocation6], %s367_s23, %s367_s23, %s368_s24  }
   0x6   :  { %s369_s25 = smov [#allocation2]   ;;  %s44_s29 = sshll.u32 %s417_s3, 4  ;;  %s45_s29 = int_to_ptr.hbm [resolvable:$true] %s44_s29 }
   0x7   :  { %s18_s26 = sshll.u32 %s369_s25, 4  ;;  %s370_s1 = smov [#allocation7]   ;;  %s19_s26 = int_to_ptr.vmem [resolvable:$true] %s18_s26 }
   0x8   :  { %24 = dma.hbm_to_vmem [thread:$0]  %s17_s22, 128, %s19_s26, [#allocation3], %s367_s23, %s367_s23, %s368_s24  }
   0x9   :  { %s46_s30 = sshll.u32 %s370_s1, 4  ;;  %s47_s30 = int_to_ptr.vmem [resolvable:$true] %s46_s30 }
   0xa   :  { %52 = dma.hbm_to_vmem [thread:$0]  %s45_s29, 128, %s47_s30, [#allocation6], %s367_s23, %s367_s23, %s368_s24  }
   0xb   :  { %360 = dma.done.wait [#allocation3], 128  }
   0xc   :  { %361 = vsyncadd [#allocation3], 4294967168 }
   0xd   :  { %362 = dma.done.wait [#allocation6], 1152  }
   0xe   :  { %363 = vsyncadd [#allocation6], 4294966144  ;;  %v246_v0 = vld [vmem:[#allocation5 + $0x38] sm:$0xff]  ;;  %v245_v1 = vld [vmem:[#allocation5 + $0x30] sm:$0xff]  ;;  %s371_s5 = smov [#allocation8]   ;;  %s188_s9 = sshll.u32 %s418_s4, 4  ;;  %s189_s9 = int_to_ptr.hbm [resolvable:$true] %s188_s9 }
   0xf   :  { %149 = vmatpush.bf16.msra.mxu0 %v246_v0  ;;  %v244_v2 = vld [vmem:[#allocation5 + $0x28] sm:$0xff]  ;;  %v243_v3 = vld [vmem:[#allocation5 + $0x20] sm:$0xff]  ;;  %v242_v4 = vld [vmem:[#allocation5 + $0x18] sm:$0xff]  ;;  %s186_s6 = sshll.u32 %s371_s5, 4  ;;  %s373_s10 = smov 8   ;;  %s187_s6 = int_to_ptr.vmem [resolvable:$true] %s186_s6 }
  0x10   :  { %v241_v5 = vld [vmem:[#allocation5 + $0x10] sm:$0xff]  ;;  %v240_v6 = vld [vmem:[#allocation5 + $0x8] sm:$0xff]  ;;  %v239_v7 = vld [vmem:[#allocation5] sm:$0xff] }
  0x11   :  { %v238_v8 = vld [vmem:[#allocation2] sm:$0xff]  ;;  %v248_v9 = vld [vmem:[#allocation7] sm:$0xff]  }
  0x12   :  { %v259_v10 = vld [vmem:[%s416_s2] ss:$0 sm:$0xff]  ;;  %v249_v11 = vunpack.c.l.bf16 %v248_v9  ;;  %v250_v15 = vunpack.c.h.bf16 %v248_v9  ;;  %s372_s2 = smov 128  }
  0x13   :  { %150 = vmatpush.bf16.msra.mxu0 %v245_v1 }
  0x17   :  { %151 = vmatpush.bf16.msra.mxu0 %v244_v2 }
  0x1b   :  { %152 = vmatpush.bf16.msra.mxu0 %v243_v3 }
  0x1f   :  { %153 = vmatpush.bf16.msra.mxu0 %v242_v4 }
  0x23   :  { %154 = vmatpush.bf16.msra.mxu0 %v241_v5 }
  0x27   :  { %155 = vmatpush.bf16.msra.mxu0 %v240_v6 }
  0x2b   :  { %156 = vmatpush.bf16.msra.mxu0 %v239_v7 }
  0x2e   :  { %157 = vmatmul.bf16.vlgmr.msra.gmra.mxu0 %v238_v8 }
  0xab   :  { %v158_v12 = vpop.f32.mrf.mxu0 }
  0xac   :  { %v163_v13 = vadd.f32 %v259_v10, %v158_v12 }
  0xae   :  { %v176_v14 = vadd.f32 %v249_v11, %v163_v13 }
  0xb0   :  { %260 = vtanh.f32 %v176_v14 }
  0xb3   :  { %v160_v16 = vpop.f32.mrf.mxu0 }
  0xb4   :  { %v164_v17 = vadd.f32 %v259_v10, %v160_v16 }
  0xb6   :  { %v261_v18 = vpop.eup %260  ;;  %v177_v19 = vadd.f32 %v250_v15, %v164_v17 }
  0xb7   :  { %180 = vst [vmem:[#allocation8] sm:$0xff] %v261_v18 }
  0xb8   :  { %262 = vtanh.f32 %v177_v19 }
  0xbe   :  { %v263_v20 = vpop.eup %262 }
  0xbf   :  { %181 = vst [vmem:[#allocation8 + $0x8] sm:$0xff] %v263_v20 }
  0xc0   :  { %194 = dma.vmem_to_hbm [thread:$0]  %s187_s6, 256, %s189_s9, [#allocation4], %s372_s2, %s372_s2, %s373_s10  }
  0xc1   :  { %364 = dma.done.wait [#allocation4], 256  }
  0xc2   :  { %365 = vsyncadd [#allocation4], 4294967040 }
  0xc3   :  { %199 = vsyncpa [#allocation3], 1 }
  0xc4   :  { %200 = vsyncpa [#allocation6], 1 }
  0xc5   :  { %201 = vsyncpa [#allocation4], 1 }

</bundles_post_ra>
